<compile_context>
chip_gen: v7x
topology: tpu7x:2x2x1
jax: 0.10.0
libtpu: 0.0.40
codegen_flags: <defaults>
</compile_context>

<pallas_src>
import functools

import jax
import jax.numpy as jnp
from jax.experimental import pallas as pl
from jax.experimental.pallas import tpu as pltpu


def _round_up(v, m):
    return -(-v // m) * m


def _focal_loss_kernel(inputs_ref, tgt_ref, loss_ref, *, alpha, gamma):
    """Per-row focal loss for one (TN, C) tile of logits.

    inputs_ref: (TN, C) logits (any float dtype; cast to f32 here).
    tgt_ref:    (TN, 1) int32 encoded targets: class id, or -1 when the target
                slot is class-masked (mask[i, targets[i]]) or the row is pad.
    loss_ref:   (1, 1, TN) f32 per-row loss, lane-dense.
    """
    x = inputs_ref[...].astype(jnp.float32)          # (TN, C)
    tgt_col = tgt_ref[...]                           # (TN, 1) int32
    tn, c = x.shape

    # Row max (stable softmax) and the target logit, both taken from the *raw*
    # tile so the gather-select does not depend on the shifted tile
    # (2 full-tile passes instead of 3).
    row_max = jnp.max(x, axis=1, keepdims=True)                       # (TN, 1)
    col_ids = jax.lax.broadcasted_iota(jnp.int32, (tn, c), 1)
    x_t = jnp.sum(jnp.where(col_ids == tgt_col, x, 0.0),
                  axis=1, keepdims=True)                              # (TN, 1)
    sumexp = jnp.sum(jnp.exp(x - row_max), axis=1, keepdims=True)     # (TN, 1)
    log_z = jnp.log(sumexp)

    log_p_raw = (x_t - row_max) - log_z       # log_softmax(x)[i, targets[i]]
    probs_raw = jnp.exp(log_p_raw)            # softmax(x)[i, targets[i]]

    # keep == 0 reproduces class_mask.masked_fill_(mask, 0): the row's one-hot
    # is all zeros, so probs = log_p = 0 and the torch loss is
    # -alpha * (1 - 0)^gamma * 0 = 0  ==  keep * loss_raw.
    keep = (tgt_col >= 0).astype(jnp.float32)         # (TN, 1)

    one_m = 1.0 - probs_raw
    g = float(gamma)
    if g == 2.0:
        focal = one_m * one_m                 # plain VPU multiplies, no EUP pow
    elif g == int(g) and g >= 0.0:
        focal = jnp.ones_like(one_m)
        for _ in range(int(g)):
            focal = focal * one_m
    else:
        focal = jnp.power(one_m, g)

    loss_col = keep * ((-alpha) * focal * log_p_raw)  # (TN, 1)
    # Lane-dense store: one small XLU transpose instead of TN/8 masked
    # partial stores into a 128x-padded (TN, 1) output buffer.
    loss_ref[0] = jnp.transpose(loss_col)             # (1, TN)


def focal_loss(inputs, targets, mask, mask2, *, alpha=0.25, gamma=2, reduction="none"):
    """JAX/Pallas equivalent of FocalLoss.forward(inputs, targets, mask, mask2).

    inputs:  (N, C) logits, any float dtype (bf16 recommended when the call is
             HBM-bandwidth-bound; the kernel computes in f32 internally).
    targets: (N,) integer class ids.
    mask:    (N, C) bool; True zeroes that slot of the scattered one-hot
             (only mask[i, targets[i]] can affect the result).
    mask2:   (N,) bool row selector (torch.nonzero(mask2) in the reference).
    """
    n, c = inputs.shape
    targets_i32 = jnp.reshape(targets, (n,)).astype(jnp.int32)

    # Only mask[i, targets[i]] matters; fold it into the target stream as a -1
    # sentinel so the kernel needs a single (N, 1) int32 side stream (no
    # separate keep stream, no (N, C) mask stream).
    if mask is None:
        masked_at_tgt = jnp.zeros((n,), dtype=jnp.bool_)
    else:
        masked_at_tgt = jnp.take_along_axis(
            jnp.asarray(mask).astype(jnp.bool_), targets_i32[:, None], axis=1)[:, 0]
    tgt_enc = jnp.where(masked_at_tgt, jnp.int32(-1), targets_i32)    # (N,)

    # Logits are streamed unpadded: Pallas handles the ragged last row block
    # and those rows' (garbage) results are discarded by the [:n] slice below.
    inputs_k = inputs
    n_rows = n
    if n < 8:  # tiny corner only; avoids a block taller than the whole array
        inputs_k = jnp.pad(inputs, ((0, 8 - n), (0, 0)))
        n_rows = 8

    # ---- Row-tile selection -------------------------------------------------
    # Target ~2 MiB of f32 logits per block (>=85% of the HBM roofline in tile
    # sweeps), capped at 4096 rows so the (TN, 1) int32 target stream's
    # 128-lane VMEM padding stays <= 2 MiB per buffer.
    tn = max(8, min(4096, ((2 << 20) // (c * 4)) // 8 * 8))
    n8 = _round_up(n_rows, 8)
    tn = min(tn, n8)
    # v7x has two TensorCores per chip: make sure the "parallel" grid axis has
    # at least two steps to shard whenever there is enough work to split.
    if n8 >= 16 and pl.cdiv(n8, tn) < 2:
        tn = _round_up(pl.cdiv(n8, 2), 8)

    grid_n = pl.cdiv(n_rows, tn)
    n_side = grid_n * tn

    tgt_p = jnp.pad(tgt_enc, (0, n_side - n), constant_values=-1).reshape(n_side, 1)

    itemsize = jnp.dtype(inputs.dtype).itemsize
    vmem_limit = (2 * tn * c * itemsize             # double-buffered logits blocks
                  + 4 * tn * c * 4                  # in-kernel f32 temporaries
                  + 2 * tn * 128 * 4                # (TN,1) target blocks pad to 128 lanes
                  + 2 * 8 * _round_up(tn, 128) * 4  # (1,TN) lane-dense output blocks
                  + (2 << 20))                      # headroom
    vmem_limit = int(min(max(vmem_limit, 8 << 20), 30 << 20))

    kernel = functools.partial(_focal_loss_kernel, alpha=float(alpha), gamma=gamma)

    per_tile = pl.pallas_call(
        kernel,
        out_shape=jax.ShapeDtypeStruct((grid_n, 1, tn), jnp.float32),
        grid=(grid_n,),
        in_specs=[
            pl.BlockSpec((tn, c), lambda i: (i, 0)),
            pl.BlockSpec((tn, 1), lambda i: (i, 0)),
        ],
        out_specs=pl.BlockSpec((1, 1, tn), lambda i: (i, 0, 0)),
        compiler_params=pltpu.CompilerParams(
            dimension_semantics=("parallel",),
            vmem_limit_bytes=vmem_limit,
        ),
    )(inputs_k, tgt_p)

    per_row = per_tile.reshape(n_side)[:n]            # (N,) f32

    # torch.nonzero(mask2).squeeze(-1): dynamic-shape row selection -> eager JAX.
    # TODO(synk): under jax.jit this needs jnp.nonzero(..., size=...) or a
    # mask-and-multiply formulation for the mean/sum reductions.
    if mask2 is None:
        positions = jnp.arange(n)
    else:
        positions = jnp.nonzero(jnp.asarray(mask2))[0]
    batch_loss = per_row[positions][:, None]          # (K, 1), matches torch shape

    if reduction == "mean":
        return batch_loss.mean()
    if reduction == "sum":
        return batch_loss.sum()
    return batch_loss


def _focal_loss_ref(inputs, targets, mask, mask2, *, alpha=0.25, gamma=2):
    """Pure-JAX reference mirroring the PyTorch forward, for verification."""
    x = inputs.astype(jnp.float32)
    p = jax.nn.softmax(x, axis=-1)
    log_probs = jax.nn.log_softmax(x, axis=1)
    n, c = x.shape
    class_mask = jax.nn.one_hot(targets, c, dtype=jnp.float32)
    class_mask = jnp.where(mask, 0.0, class_mask)
    probs = jnp.sum(p * class_mask, axis=1, keepdims=True)
    log_p = jnp.sum(log_probs * class_mask, axis=1, keepdims=True)
    positions = jnp.nonzero(mask2)[0]
    probs = probs[positions]
    log_p = log_p[positions]
    return -alpha * jnp.power(1.0 - probs, gamma) * log_p


def _run_case(key, n, c, dtype=jnp.float32, atol=1e-5):
    k1, k2, k3, k4 = jax.random.split(key, 4)
    inputs = jax.random.normal(k1, (n, c), dtype=jnp.float32).astype(dtype)
    targets = jax.random.randint(k2, (n,), 0, c, dtype=jnp.int32)
    mask = jax.random.bernoulli(k3, p=0.1, shape=(n, c))   # True => zero class_mask slot
    mask2 = jax.random.bernoulli(k4, p=0.75, shape=(n,))   # True => keep row
    out = focal_loss(inputs, targets, mask, mask2, alpha=0.25, gamma=2, reduction="none")
    out = jax.block_until_ready(out)
    ref = _focal_loss_ref(inputs, targets, mask, mask2, alpha=0.25, gamma=2)
    assert out.shape == ref.shape, (out.shape, ref.shape)
    assert jnp.allclose(out, ref, atol=atol, rtol=1e-4), \
        float(jnp.max(jnp.abs(out.astype(jnp.float32) - ref)))


if __name__ == "__main__":
    key = jax.random.PRNGKey(0)
    k_a, k_b, k_c, k_d = jax.random.split(key, 4)

    # Small shape consistent with the module (batch_size, class_number).
    _run_case(k_a, 8, 16)
    # Ragged last row block (N not a multiple of the tile) — no pad copy of logits.
    _run_case(k_b, 37, 16)
    # Two "parallel" grid tiles, lane-dense class dim.
    _run_case(k_c, 1200, 128)
    # bf16 logits stream (halves HBM traffic; kernel computes in f32).
    _run_case(k_d, 96, 64, dtype=jnp.bfloat16, atol=1e-4)

    print("KERNEL_OK")
</pallas_src>

<mosaic_0001>
module attributes {stable_mosaic.version = 11 : i64} {
  func.func @_focal_loss_kernel(%arg0: i32, %arg1: memref<8x16xf32, #tpu.memory_space<vmem>>, %arg2: memref<8x1xi32, #tpu.memory_space<vmem>>, %arg3: memref<1x1x8xf32, #tpu.memory_space<vmem>>) attributes {dimension_semantics = [#tpu.dimension_semantics<parallel>], iteration_bounds = array<i64: 1>, scalar_prefetch = 0 : i64, scratch_operands = 0 : i64, tpu.core_type = #tpu.core_type<tc>, window_params = [{transform_indices = @transform_0, window_bounds = array<i64: 8, 16>}, {transform_indices = @transform_1, window_bounds = array<i64: 8, 1>}, {transform_indices = @transform_2, window_bounds = array<i64: 1, 1, 8>}]} {
    %c0 = arith.constant 0 : index
    %c0_0 = arith.constant 0 : index
    %0 = vector.load %arg1[%c0, %c0_0] : memref<8x16xf32, #tpu.memory_space<vmem>>, vector<8x16xf32>
    %c0_1 = arith.constant 0 : index
    %c0_2 = arith.constant 0 : index
    %1 = vector.load %arg2[%c0_1, %c0_2] : memref<8x1xi32, #tpu.memory_space<vmem>>, vector<8x1xi32>
    %cst = arith.constant dense<0xFF800000> : vector<8xf32>
    %2 = vector.multi_reduction <maximumf>, %0, %cst [1] : vector<8x16xf32> to vector<8xf32>
    %3 = vector.shape_cast %2 : vector<8xf32> to vector<8x1xf32>
    %4 = tpu.iota {dimensions = array<i32: 1>} : vector<8x16xi32>
    %5 = vector.broadcast %1 : vector<8x1xi32> to vector<8x16xi32>
    %6 = arith.cmpi eq, %4, %5 : vector<8x16xi32>
    %cst_3 = arith.constant 0.000000e+00 : f32
    %7 = vector.broadcast %cst_3 : f32 to vector<8x16xf32>
    %8 = arith.select %6, %0, %7 : vector<8x16xi1>, vector<8x16xf32>
    %cst_4 = arith.constant dense<0.000000e+00> : vector<8xf32>
    %9 = vector.multi_reduction <add>, %8, %cst_4 [1] : vector<8x16xf32> to vector<8xf32>
    %10 = vector.shape_cast %9 : vector<8xf32> to vector<8x1xf32>
    %11 = vector.broadcast %3 : vector<8x1xf32> to vector<8x16xf32>
    %12 = arith.subf %0, %11 : vector<8x16xf32>
    %13 = math.exp %12 : vector<8x16xf32>
    %cst_5 = arith.constant dense<0.000000e+00> : vector<8xf32>
    %14 = vector.multi_reduction <add>, %13, %cst_5 [1] : vector<8x16xf32> to vector<8xf32>
    %15 = vector.shape_cast %14 : vector<8xf32> to vector<8x1xf32>
    %16 = math.log %15 : vector<8x1xf32>
    %17 = arith.subf %10, %3 : vector<8x1xf32>
    %18 = arith.subf %17, %16 : vector<8x1xf32>
    %19 = math.exp %18 : vector<8x1xf32>
    %c0_i32 = arith.constant 0 : i32
    %20 = vector.broadcast %c0_i32 : i32 to vector<8x1xi32>
    %21 = arith.cmpi sge, %1, %20 : vector<8x1xi32>
    %22 = arith.extui %21 : vector<8x1xi1> to vector<8x1xi32>
    %23 = arith.sitofp %22 : vector<8x1xi32> to vector<8x1xf32>
    %cst_6 = arith.constant 1.000000e+00 : f32
    %24 = vector.broadcast %cst_6 : f32 to vector<8x1xf32>
    %25 = arith.subf %24, %19 : vector<8x1xf32>
    %26 = arith.mulf %25, %25 : vector<8x1xf32>
    %cst_7 = arith.constant -2.500000e-01 : f32
    %27 = vector.broadcast %cst_7 : f32 to vector<8x1xf32>
    %28 = arith.mulf %27, %26 : vector<8x1xf32>
    %29 = arith.mulf %28, %18 : vector<8x1xf32>
    %30 = arith.mulf %23, %29 : vector<8x1xf32>
    %31 = tpu.transpose %30, [1, 0] : vector<8x1xf32> -> vector<1x8xf32>
    %c0_8 = arith.constant 0 : index
    %c0_9 = arith.constant 0 : index
    %c0_10 = arith.constant 0 : index
    %32 = vector.load %arg3[%c0_8, %c0_9, %c0_10] : memref<1x1x8xf32, #tpu.memory_space<vmem>>, vector<1x1x8xf32>
    %33 = vector.shape_cast %32 : vector<1x1x8xf32> to vector<1x8xf32>
    %34 = vector.shape_cast %31 : vector<1x8xf32> to vector<1x1x8xf32>
    tpu.vector_store %arg3[%c0_8, %c0_9, %c0_10], %34 {strides = array<i32>} : memref<1x1x8xf32, #tpu.memory_space<vmem>>, vector<1x1x8xf32>,
    return
  }
  func.func @transform_0(%arg0: i32) -> (i32, i32) {
    %c0_i32 = arith.constant 0 : i32
    %c0_i32_0 = arith.constant 0 : i32
    return %arg0, %c0_i32 : i32, i32
  }
  func.func @transform_1(%arg0: i32) -> (i32, i32) {
    %c0_i32 = arith.constant 0 : i32
    %c0_i32_0 = arith.constant 0 : i32
    return %arg0, %c0_i32 : i32, i32
  }
  func.func @transform_2(%arg0: i32) -> (i32, i32, i32) {
    %c0_i32 = arith.constant 0 : i32
    %c0_i32_0 = arith.constant 0 : i32
    %c0_i32_1 = arith.constant 0 : i32
    return %arg0, %c0_i32, %c0_i32_0 : i32, i32, i32
  }
}

</mosaic_0001>

<bundles_post_ra>
// kernel: tpu_custom_call.1
= control target key start
LH: loop header
LB: loop body
LE: loop exit
PB: predicated region body
PF: predicated region fallthrough
CT: control target
= control target key end

     0   :  { %vm14_vm0 = vcmask 130048   ;;  %s170_s0 = inlined_call_operand.vmem [shape: f32[8,16], index: 0, kind: input, shape index: {}]   ;;  %s171_s1 = inlined_call_operand.vmem [shape: s32[8,1], index: 1, kind: input, shape index: {}]   ;;  %s172_s2 = inlined_call_operand.hbm [shape: f32[1,1,8], index: 2, kind: output, shape index: {}]  }
   0x1   :  { %v12_v0 = vld [vmem:[%s170_s0] sm:$0xff] }
   0x2   :  { %7 = vsyncpa [#allocation3], 0  ;;  %v15_v1 = vsel %vm14_vm0, %v12_v0, -inf  ;;  %v131_v2 = vmov 0   ;;  %v13_v3 = vld [vmem:[%s171_s1] sm:$0xff]  ;;  %v18_v7 = vlaneseq  ;;  %v132_v25 = vmov 0.0  }
   0x3   :  { %100 = vset.pattern.permute.xlu0 %v131_v2  ;;  %vm40_vm2 = vcmp.ge.s32.totalorder %v13_v3, 0  ;;  %s133_s0 = smov [#allocation2]   ;;  %vm80_vm3 = vcmask 57344  }
   0x4   :  { %16 = vmax.xlane.f32.xlu0 %v15_v1  ;;  %v19_v8 = vand.u32 127, %v18_v7  ;;  %v96_v26 = vsel %vm40_vm2, 1.0, %v132_v25  ;;  %s88_s1 = sshll.u32 %s133_s0, 4  ;;  %s89_s1 = int_to_ptr.vmem [resolvable:$true] %s88_s1 }
   0x5   :  { %s107_s13 = scalar_lea.vmem %s89_s1, 16  ;;  %s111_s14 = scalar_lea.vmem %s89_s1, 32 }
   0x6   :  { %p108_p0 = scmp.ne.s32.totalorder %s89_s1, %s107_s13  ;;  %p112_p1 = scmp.lt.s32.totalorder %s89_s1, %s89_s1 }
   0x7   :  { %p113_p2 = scmp.lt.s32.totalorder %s111_s14, %s107_s13 }
   0x9   :  { %p114_p3 = por %p113_p2, %p112_p1 }
   0xb   :  { %p115_p4 = pnand %p114_p3, %p108_p0 }
  0x1a   :  { %21 = vperm.xlu0 %100, %v13_v3  }
  0x91   :  { %v17_v4 = vpop.xlane.xlu0 %16 }
  0x92   :  { %v28_v5 = vsub.f32 %v12_v0, %v17_v4 }
  0x94   :  { %v29_v6 = vmul.f32 1.442695, %v28_v5 }
  0x96   :  { %101 = vpow2.f32 %v29_v6 }
  0x99   :  { %v22_v9 = vpop.permute.xlu0 %21 }
  0x9a   :  { %vm23_vm1 = vcmp.eq.s32.totalorder %v19_v8, %v22_v9 }
  0x9b   :  { %v24_v11 = vsel %vm23_vm1, %v12_v0, 0.0 }
  0x9c   :  { %v25_v13 = vsel %vm14_vm0, %v24_v11, 0.0 }
  0xa0   :  { %v102_v10 = vpop.eup %101 }
  0xa1   :  { %v31_v12 = vsel %vm14_vm0, %v102_v10, 0.0 }
  0xa2   :  { %32 = vadd.xlane.f32.xlu1 %v31_v12 }
  0xa6   :  { %26 = vadd.xlane.f32.xlu1 %v25_v13 }
 0x12f   :  { %v33_v14 = vpop.xlane.xlu1 %32 }
 0x130   :  { %103 = vlog2.f32 %v33_v14 }
 0x133   :  { %v27_v15 = vpop.xlane.xlu1 %26 }
 0x134   :  { %v36_v18 = vsub.f32 %v27_v15, %v17_v4 }
 0x13a   :  { %v104_v16 = vpop.eup %103 }
 0x13b   :  { %v35_v17 = vmul.f32 0.6931472, %v104_v16 }
 0x13d   :  { %v37_v19 = vsub.f32 %v36_v18, %v35_v17 }
 0x13f   :  { %v38_v20 = vmul.f32 1.442695, %v37_v19 }
 0x141   :  { %105 = vpow2.f32 %v38_v20 }
 0x14b   :  { %v106_v21 = vpop.eup %105 }
 0x14c   :  { %v43_v22 = vsub.f32 1.0, %v106_v21 }
 0x14e   :  { %v44_v23 = vmul.f32 %v43_v22, %v43_v22 }
 0x150   :  { %v45_v24 = vmul.f32 -0.25, %v44_v23 }
 0x152   :  { %v46_v27 = vmul.f32 %v45_v24, %v37_v19 }
 0x154   :  { %v47_v28 = vmul.f32 %v96_v26, %v46_v27 }
 0x156   :  { %48 = vxpose.xlu1.b32.start.end [1/1] (short) (narrow) %v47_v28, 8 }
 0x1d6   :  { %v64_v29 = vpop.trf.xlu1 }
 0x1d7   :  { %81 = vst.msk [vmem:[#allocation2] sm:$0x1] %vm80_vm3, %v64_v29 }
 0x1d8   :  { %118 = shalt.err (!%p115_p4)
}
 0x1d9   :  { %s119_s17 = scalar_lea.hbm %s172_s2, 16 }
 0x1da   :  { %p120_p5 = scmp.ne.s32.totalorder %s172_s2, %s119_s17  ;;  %p123_p6 = scmp.lt.u32.totalorder %s119_s17, %s172_s2 }
 0x1dc   :  { %p125_p7 = pnand %p123_p6, %p120_p5 }
 0x1de   :  { %128 = shalt.err (!%p125_p7)
}
 0x1df   :  { %91 = dma.vmem_to_hbm [thread:$0]  %s89_s1, 16, %s172_s2, [#allocation3]  }
 0x1e0   :  { %129 = dma.done.wait [#allocation3], 16  }
 0x1e1   :  { %130 = vsyncadd [#allocation3], 4294967280 }
 0x1e2   :  { %95 = vsyncpa [#allocation3], 1 }

</bundles_post_ra>
